<compile_context>
chip_gen: v5e
topology: v5e:2x2
jax: 0.10.0
libtpu: 0.0.40
codegen_flags: <defaults>
</compile_context>

<pallas_src>
import jax
import jax.numpy as jnp
from jax.experimental import pallas as pl
from jax.experimental.pallas import tpu as pltpu

IN_SIZE = 32
HIDDEN = (64, 48)
OUT_SIZE = 10

# Max rows per grid step. Large tiles amortize the ~0.35 us per-step overhead;
# at 4096 rows the VMEM footprint (x tile 512 KiB + out tile 160 KiB, double
# buffered, + ~22 KiB resident params) is tiny on v5e/v6e/v7x alike.
TILE_N_MAX = 4096


def _round_up(x, m):
    return (x + m - 1) // m * m


def _mlp_kernel(x_ref, w1_ref, b1_ref, w2_ref, b2_ref, w3_ref, b3_ref, o_ref):
    """One batch tile: two Linear+ReLU, final Linear, log_softmax over dim=1."""
    x = x_ref[...]

    # hidden layer 1: Linear + ReLU
    h1 = jnp.dot(x, w1_ref[...], preferred_element_type=jnp.float32) + b1_ref[...]
    h1 = jnp.maximum(h1, 0.0)
    # TODO(synk): dropout omitted because drop_p=None in this config; a
    # pltpu.prng_seed / pltpu.prng_random_bits mask would go here for training.

    # hidden layer 2: Linear + ReLU
    h2 = jnp.dot(h1, w2_ref[...], preferred_element_type=jnp.float32) + b2_ref[...]
    h2 = jnp.maximum(h2, 0.0)

    # output layer
    logits = jnp.dot(h2, w3_ref[...], preferred_element_type=jnp.float32) + b3_ref[...]

    # activation = log_softmax over dim=1 (feature axis), max-shift for stability
    m = jnp.max(logits, axis=-1, keepdims=True)
    shifted = logits - m
    lse = jnp.log(jnp.sum(jnp.exp(shifted), axis=-1, keepdims=True))
    o_ref[...] = (shifted - lse).astype(o_ref.dtype)


@jax.jit
def mlp_forward(x, w1, b1, w2, b2, w3, b3):
    # Flatten exactly like x.view(-1, in_size)
    assert x.size % IN_SIZE == 0, "total elements must be divisible by in_size"
    x2d = x.reshape(-1, IN_SIZE).astype(jnp.float32)
    n = x2d.shape[0]

    # Batch tile: multiple of 8 sublanes; pad N up to a whole number of tiles so
    # every grid step sees a full block (padded rows are sliced off afterwards).
    tile_n = min(TILE_N_MAX, _round_up(n, 8))
    n_pad = _round_up(n, tile_n)
    if n_pad != n:
        x2d = jnp.pad(x2d, ((0, n_pad - n), (0, 0)))
    grid = (n_pad // tile_n,)

    param_bytes = sum(int(a.size) * 4 for a in (w1, b1, w2, b2, w3, b3))
    cost = pl.CostEstimate(
        flops=2 * n_pad * (IN_SIZE * HIDDEN[0]
                           + HIDDEN[0] * HIDDEN[1]
                           + HIDDEN[1] * OUT_SIZE),
        transcendentals=n_pad * (OUT_SIZE + 1),
        bytes_accessed=n_pad * (IN_SIZE + OUT_SIZE) * 4 + param_bytes,
    )

    # Weights/biases: constant index_map -> resident in VMEM across grid steps.
    def resident(shape):
        return pl.BlockSpec(shape, lambda i: (0, 0))

    out = pl.pallas_call(
        _mlp_kernel,
        out_shape=jax.ShapeDtypeStruct((n_pad, OUT_SIZE), jnp.float32),
        grid_spec=pltpu.PrefetchScalarGridSpec(
            num_scalar_prefetch=0,
            grid=grid,
            in_specs=[
                pl.BlockSpec((tile_n, IN_SIZE), lambda i: (i, 0)),  # x tile
                resident((IN_SIZE, HIDDEN[0])),                     # w1
                resident((1, HIDDEN[0])),                           # b1
                resident((HIDDEN[0], HIDDEN[1])),                   # w2
                resident((1, HIDDEN[1])),                           # b2
                resident((HIDDEN[1], OUT_SIZE)),                    # w3
                resident((1, OUT_SIZE)),                            # b3
            ],
            out_specs=pl.BlockSpec((tile_n, OUT_SIZE), lambda i: (i, 0)),
        ),
        compiler_params=pltpu.CompilerParams(
            # batch tiles are independent -> shard across v7x's two TensorCores
            dimension_semantics=("parallel",),
        ),
        cost_estimate=cost,
    )(x2d, w1, b1, w2, b2, w3, b3)

    return out[:n]


def _reference(x, w1, b1, w2, b2, w3, b3):
    """Pure-JAX reference of the PyTorch forward pass."""
    x2d = x.reshape(-1, IN_SIZE).astype(jnp.float32)
    h1 = jnp.maximum(x2d @ w1 + b1, 0.0)
    h2 = jnp.maximum(h1 @ w2 + b2, 0.0)
    logits = h2 @ w3 + b3
    return jax.nn.log_softmax(logits, axis=1)


def init_params(key):
    """Deterministic Kaiming-uniform-ish init, weights stored as (in, out)."""
    ks = jax.random.split(key, 6)

    def lin(kw, kb, fan_in, fan_out):
        bound = 1.0 / jnp.sqrt(fan_in)
        w = jax.random.uniform(kw, (fan_in, fan_out), jnp.float32, -bound, bound)
        b = jax.random.uniform(kb, (1, fan_out), jnp.float32, -bound, bound)
        return w, b

    w1, b1 = lin(ks[0], ks[1], IN_SIZE, HIDDEN[0])
    w2, b2 = lin(ks[2], ks[3], HIDDEN[0], HIDDEN[1])
    w3, b3 = lin(ks[4], ks[5], HIDDEN[1], OUT_SIZE)
    return w1, b1, w2, b2, w3, b3


if __name__ == "__main__":
    key = jax.random.PRNGKey(0)
    k_x, k_x2, k_p = jax.random.split(key, 3)

    params = init_params(k_p)

    # Small primary input, consistent with x.view(-1, 32).
    batch = 8
    x = jax.random.normal(k_x, (batch, IN_SIZE), jnp.float32)

    out = mlp_forward(x, *params)
    jax.block_until_ready(out)

    assert out.shape == (batch, OUT_SIZE)
    # log_softmax rows exponentiate-sum to 1
    row_sums = jnp.sum(jnp.exp(out), axis=-1)
    assert jnp.allclose(row_sums, 1.0, atol=1e-4)
    # match the pure-JAX reference
    ref = _reference(x, *params)
    assert jnp.allclose(out, ref, atol=1e-3, rtol=1e-3)

    # Second shape exercises the padded remainder tile (N not a multiple of 8).
    x2 = jax.random.normal(k_x2, (37, IN_SIZE), jnp.float32)
    out2 = mlp_forward(x2, *params)
    jax.block_until_ready(out2)
    assert out2.shape == (37, OUT_SIZE)
    assert jnp.allclose(out2, _reference(x2, *params), atol=1e-3, rtol=1e-3)

    print("KERNEL_OK")
</pallas_src>

<mosaic_0001>
module attributes {stable_mosaic.version = 11 : i64} {
  func.func @_mlp_kernel(%arg0: i32, %arg1: memref<8x32xf32, #tpu.memory_space<vmem>>, %arg2: memref<32x64xf32, #tpu.memory_space<vmem>>, %arg3: memref<1x64xf32, #tpu.memory_space<vmem>>, %arg4: memref<64x48xf32, #tpu.memory_space<vmem>>, %arg5: memref<1x48xf32, #tpu.memory_space<vmem>>, %arg6: memref<48x10xf32, #tpu.memory_space<vmem>>, %arg7: memref<1x10xf32, #tpu.memory_space<vmem>>, %arg8: memref<8x10xf32, #tpu.memory_space<vmem>>) attributes {dimension_semantics = [#tpu.dimension_semantics<parallel>], iteration_bounds = array<i64: 1>, scalar_prefetch = 0 : i64, scratch_operands = 0 : i64, tpu.core_type = #tpu.core_type<tc>, window_params = [{transform_indices = @transform_0, window_bounds = array<i64: 8, 32>}, {pipeline_mode = #tpu.pipeline_mode<synchronous>, transform_indices = @transform_1, window_bounds = array<i64: 32, 64>}, {pipeline_mode = #tpu.pipeline_mode<synchronous>, transform_indices = @transform_2, window_bounds = array<i64: 1, 64>}, {pipeline_mode = #tpu.pipeline_mode<synchronous>, transform_indices = @transform_3, window_bounds = array<i64: 64, 48>}, {pipeline_mode = #tpu.pipeline_mode<synchronous>, transform_indices = @transform_4, window_bounds = array<i64: 1, 48>}, {pipeline_mode = #tpu.pipeline_mode<synchronous>, transform_indices = @transform_5, window_bounds = array<i64: 48, 10>}, {pipeline_mode = #tpu.pipeline_mode<synchronous>, transform_indices = @transform_6, window_bounds = array<i64: 1, 10>}, {transform_indices = @transform_7, window_bounds = array<i64: 8, 10>}]} {
    %c0 = arith.constant 0 : index
    %c0_0 = arith.constant 0 : index
    %0 = vector.load %arg1[%c0, %c0_0] : memref<8x32xf32, #tpu.memory_space<vmem>>, vector<8x32xf32>
    %c0_1 = arith.constant 0 : index
    %c0_2 = arith.constant 0 : index
    %1 = vector.load %arg2[%c0_1, %c0_2] : memref<32x64xf32, #tpu.memory_space<vmem>>, vector<32x64xf32>
    %cst = arith.constant dense<0.000000e+00> : vector<8x64xf32>
    %2 = tpu.matmul %0, %1, %cst {dimension_numbers = #tpu.dot_dimension_numbers<[1], [0], [0], [1], [0, 0, 1, 1], [], []>} : vector<8x32xf32>, vector<32x64xf32>, vector<8x64xf32> -> vector<8x64xf32>
    %c0_3 = arith.constant 0 : index
    %c0_4 = arith.constant 0 : index
    %3 = vector.load %arg3[%c0_3, %c0_4] : memref<1x64xf32, #tpu.memory_space<vmem>>, vector<1x64xf32>
    %4 = vector.broadcast %3 : vector<1x64xf32> to vector<8x64xf32>
    %5 = arith.addf %2, %4 : vector<8x64xf32>
    %cst_5 = arith.constant 0.000000e+00 : f32
    %6 = vector.broadcast %cst_5 : f32 to vector<8x64xf32>
    %7 = arith.maximumf %5, %6 : vector<8x64xf32>
    %c0_6 = arith.constant 0 : index
    %c0_7 = arith.constant 0 : index
    %8 = vector.load %arg4[%c0_6, %c0_7] : memref<64x48xf32, #tpu.memory_space<vmem>>, vector<64x48xf32>
    %cst_8 = arith.constant dense<0.000000e+00> : vector<8x48xf32>
    %9 = tpu.matmul %7, %8, %cst_8 {dimension_numbers = #tpu.dot_dimension_numbers<[1], [0], [0], [1], [0, 0, 1, 1], [], []>} : vector<8x64xf32>, vector<64x48xf32>, vector<8x48xf32> -> vector<8x48xf32>
    %c0_9 = arith.constant 0 : index
    %c0_10 = arith.constant 0 : index
    %10 = vector.load %arg5[%c0_9, %c0_10] : memref<1x48xf32, #tpu.memory_space<vmem>>, vector<1x48xf32>
    %11 = vector.broadcast %10 : vector<1x48xf32> to vector<8x48xf32>
    %12 = arith.addf %9, %11 : vector<8x48xf32>
    %cst_11 = arith.constant 0.000000e+00 : f32
    %13 = vector.broadcast %cst_11 : f32 to vector<8x48xf32>
    %14 = arith.maximumf %12, %13 : vector<8x48xf32>
    %c0_12 = arith.constant 0 : index
    %c0_13 = arith.constant 0 : index
    %15 = vector.load %arg6[%c0_12, %c0_13] : memref<48x10xf32, #tpu.memory_space<vmem>>, vector<48x10xf32>
    %cst_14 = arith.constant dense<0.000000e+00> : vector<8x10xf32>
    %16 = tpu.matmul %14, %15, %cst_14 {dimension_numbers = #tpu.dot_dimension_numbers<[1], [0], [0], [1], [0, 0, 1, 1], [], []>} : vector<8x48xf32>, vector<48x10xf32>, vector<8x10xf32> -> vector<8x10xf32>
    %c0_15 = arith.constant 0 : index
    %c0_16 = arith.constant 0 : index
    %17 = vector.load %arg7[%c0_15, %c0_16] : memref<1x10xf32, #tpu.memory_space<vmem>>, vector<1x10xf32>
    %18 = vector.broadcast %17 : vector<1x10xf32> to vector<8x10xf32>
    %19 = arith.addf %16, %18 : vector<8x10xf32>
    %cst_17 = arith.constant dense<0xFF800000> : vector<8xf32>
    %20 = vector.multi_reduction <maximumf>, %19, %cst_17 [1] : vector<8x10xf32> to vector<8xf32>
    %21 = vector.shape_cast %20 : vector<8xf32> to vector<8x1xf32>
    %22 = vector.broadcast %21 : vector<8x1xf32> to vector<8x10xf32>
    %23 = arith.subf %19, %22 : vector<8x10xf32>
    %24 = math.exp %23 : vector<8x10xf32>
    %cst_18 = arith.constant dense<0.000000e+00> : vector<8xf32>
    %25 = vector.multi_reduction <add>, %24, %cst_18 [1] : vector<8x10xf32> to vector<8xf32>
    %26 = vector.shape_cast %25 : vector<8xf32> to vector<8x1xf32>
    %27 = math.log %26 : vector<8x1xf32>
    %28 = vector.broadcast %27 : vector<8x1xf32> to vector<8x10xf32>
    %29 = arith.subf %23, %28 : vector<8x10xf32>
    %c0_19 = arith.constant 0 : index
    %c0_20 = arith.constant 0 : index
    %30 = vector.load %arg8[%c0_19, %c0_20] : memref<8x10xf32, #tpu.memory_space<vmem>>, vector<8x10xf32>
    tpu.vector_store %arg8[%c0_19, %c0_20], %29 {strides = array<i32>} : memref<8x10xf32, #tpu.memory_space<vmem>>, vector<8x10xf32>,
    return
  }
  func.func @transform_0(%arg0: i32) -> (i32, i32) {
    %c0_i32 = arith.constant 0 : i32
    %c0_i32_0 = arith.constant 0 : i32
    return %arg0, %c0_i32 : i32, i32
  }
  func.func @transform_1(%arg0: i32) -> (i32, i32) {
    %c0_i32 = arith.constant 0 : i32
    %c0_i32_0 = arith.constant 0 : i32
    %c0_i32_1 = arith.constant 0 : i32
    return %c0_i32, %c0_i32_0 : i32, i32
  }
  func.func @transform_2(%arg0: i32) -> (i32, i32) {
    %c0_i32 = arith.constant 0 : i32
    %c0_i32_0 = arith.constant 0 : i32
    %c0_i32_1 = arith.constant 0 : i32
    return %c0_i32, %c0_i32_0 : i32, i32
  }
  func.func @transform_3(%arg0: i32) -> (i32, i32) {
    %c0_i32 = arith.constant 0 : i32
    %c0_i32_0 = arith.constant 0 : i32
    %c0_i32_1 = arith.constant 0 : i32
    return %c0_i32, %c0_i32_0 : i32, i32
  }
  func.func @transform_4(%arg0: i32) -> (i32, i32) {
    %c0_i32 = arith.constant 0 : i32
    %c0_i32_0 = arith.constant 0 : i32
    %c0_i32_1 = arith.constant 0 : i32
    return %c0_i32, %c0_i32_0 : i32, i32
  }
  func.func @transform_5(%arg0: i32) -> (i32, i32) {
    %c0_i32 = arith.constant 0 : i32
    %c0_i32_0 = arith.constant 0 : i32
    %c0_i32_1 = arith.constant 0 : i32
    return %c0_i32, %c0_i32_0 : i32, i32
  }
  func.func @transform_6(%arg0: i32) -> (i32, i32) {
    %c0_i32 = arith.constant 0 : i32
    %c0_i32_0 = arith.constant 0 : i32
    %c0_i32_1 = arith.constant 0 : i32
    return %c0_i32, %c0_i32_0 : i32, i32
  }
  func.func @transform_7(%arg0: i32) -> (i32, i32) {
    %c0_i32 = arith.constant 0 : i32
    %c0_i32_0 = arith.constant 0 : i32
    return %arg0, %c0_i32 : i32, i32
  }
}

</mosaic_0001>

<bundles_post_ra>
// kernel: mlp_forward.1
= control target key start
LH: loop header
LB: loop body
LE: loop exit
PB: predicated region body
PF: predicated region fallthrough
CT: control target
= control target key end

     0   :  { %s312_s0 = inlined_call_operand.vmem [shape: f32[8,32], index: 0, kind: input, shape index: {}]   ;;  %s313_s1 = inlined_call_operand.vmem [shape: f32[32,64], index: 1, kind: input, shape index: {}]   ;;  %s314_s2 = inlined_call_operand.vmem [shape: f32[1,64], index: 2, kind: input, shape index: {}]   ;;  %s315_s3 = inlined_call_operand.vmem [shape: f32[64,48], index: 3, kind: input, shape index: {}]   ;;  %s316_s4 = inlined_call_operand.vmem [shape: f32[1,48], index: 4, kind: input, shape index: {}]   ;;  %s317_s5 = inlined_call_operand.vmem [shape: f32[48,10], index: 5, kind: input, shape index: {}]   ;;  %s318_s6 = inlined_call_operand.vmem [shape: f32[1,10], index: 6, kind: input, shape index: {}]   ;;  %s319_s7 = inlined_call_operand.hbm [shape: f32[8,10], index: 7, kind: output, shape index: {}]  }
   0x1   :  { %v31_v0 = vld [vmem:[%s313_s1 + $0x18] sm:$0xff]  ;;  %v30_v1 = vld [vmem:[%s313_s1 + $0x10] sm:$0xff]  ;;  %v29_v3 = vld [vmem:[%s313_s1 + $0x8] sm:$0xff] }
   0x2   :  { %52 = vmatpush.msra.mxu0 %v31_v0  ;;  %v68_v2 = vld [vmem:[%s315_s3 + $0x38] sm:$0xff]  ;;  %v67_v4 = vld [vmem:[%s315_s3 + $0x30] sm:$0xff]  ;;  %v28_v5 = vld [vmem:[%s313_s1] sm:$0xff] }
   0x3   :  { %85 = vmatpush.msra.mxu1 %v68_v2  ;;  %v66_v6 = vld [vmem:[%s315_s3 + $0x28] sm:$0xff] }
   0x4   :  { %53 = vmatpush.msra.mxu0 %v30_v1 }
   0x5   :  { %86 = vmatpush.msra.mxu1 %v67_v4 }
   0x6   :  { %12 = vsyncpa [#allocation3], 0  ;;  %54 = vmatpush.msra.mxu0 %v29_v3  ;;  %v27_v7 = vld [vmem:[%s312_s0] sm:$0xff]  ;;  %vm36_vm0 = vcmask 261120   ;;  %v64_v9 = vld [vmem:[%s315_s3 + $0x18] sm:$0xff]  ;;  %vm73_vm1 = vcmask 523264  }
   0x7   :  { %v65_v8 = vld [vmem:[%s315_s3 + $0x20] sm:$0xff]  ;;  %87 = vmatpush.msra.mxu1 %v66_v6  ;;  %v63_v10 = vld [vmem:[%s315_s3 + $0x10] sm:$0xff]  ;;  %v62_v11 = vld [vmem:[%s315_s3 + $0x8] sm:$0xff]  ;;  %vm108_vm2 = vcmask 392192   ;;  %vm132_vm3 = vcmask 80896   ;;  %s153_s19 = sshll.u32 %s319_s7, 4  ;;  %s154_s19 = int_to_ptr.hbm [resolvable:$true] %s153_s19 }
   0x8   :  { %55 = vmatpush.msra.mxu0 %v28_v5  ;;  %v61_v12 = vld [vmem:[%s315_s3] sm:$0xff]  ;;  %v103_v13 = vld [vmem:[%s317_s5 + $0x28] sm:$0xff]  ;;  %v101_v15 = vld [vmem:[%s317_s5 + $0x18] sm:$0xff] }
   0x9   :  { %162 = vmatmul.msk.f32.vlgmr.msra.gmra.mxu0 %vm36_vm0, %v27_v7  ;;  %88 = vmatpush.msra.mxu1 %v65_v8  ;;  %v102_v14 = vld [vmem:[%s317_s5 + $0x20] sm:$0xff]  ;;  %v100_v20 = vld [vmem:[%s317_s5 + $0x10] sm:$0xff]  ;;  %v99_v21 = vld [vmem:[%s317_s5 + $0x8] sm:$0xff] }
   0xa   :  { %122 = vmatpush.msra.mxu2 %v103_v13  ;;  %v166_v16 = vld [vmem:[%s314_s2] ss:$0 sm:$0xff] }
   0xb   :  { %89 = vmatpush.msra.mxu1 %v64_v9  ;;  %v98_v22 = vld [vmem:[%s317_s5] sm:$0xff] }
   0xc   :  { %123 = vmatpush.msra.mxu2 %v102_v14  ;;  %v167_v23 = vld [vmem:[%s316_s4] ss:$0 sm:$0xff]  ;;  %s199_s4 = smov [#allocation2]  }
   0xd   :  { %90 = vmatpush.msra.mxu1 %v63_v10  ;;  %v168_v27 = vld [vmem:[%s318_s6] ss:$0 sm:$0xff]  ;;  %s151_s5 = sshll.u32 %s199_s4, 4  ;;  %s152_s5 = int_to_ptr.vmem [resolvable:$true] %s151_s5 }
   0xe   :  { %124 = vmatpush.msra.mxu2 %v101_v15 }
   0xf   :  { %91 = vmatpush.msra.mxu1 %v62_v11 }
  0x10   :  { %125 = vmatpush.msra.mxu2 %v100_v20 }
  0x11   :  { %92 = vmatpush.msra.mxu1 %v61_v12 }
  0x12   :  { %126 = vmatpush.msra.mxu2 %v99_v21 }
  0x14   :  { %127 = vmatpush.msra.mxu2 %v98_v22 }
  0x86   :  { %v57_v17 = vpop.f32.mrf.mxu0 }
  0x87   :  { %v58_v18 = vadd.f32 %v166_v16, %v57_v17 }
  0x89   :  { %v60_v19 = vmax.f32 %v58_v18, 0.0 }
  0x8b   :  { %163 = vmatmul.msk.f32.vlgmr.msra.gmra.mxu1 %vm73_vm1, %v60_v19 }
 0x108   :  { %v94_v24 = vpop.f32.mrf.mxu1 }
 0x109   :  { %v95_v25 = vadd.f32 %v167_v23, %v94_v24 }
 0x10b   :  { %v97_v26 = vmax.f32 %v95_v25, 0.0 }
 0x10d   :  { %164 = vmatmul.msk.f32.vlgmr.msra.gmra.mxu2 %vm108_vm2, %v97_v26 }
 0x190   :  { %v129_v28 = vpop.f32.mrf.mxu2 }
 0x191   :  { %v130_v29 = vadd.f32 %v168_v27, %v129_v28 }
 0x193   :  { %v133_v30 = vsel %vm132_vm3, %v130_v29, -inf }
 0x194   :  { %134 = vmax.xlane.f32.xlu0 %v133_v30 }
 0x207   :  { %v135_v31 = vpop.xlane.xlu0 %134 }
 0x208   :  { %v136_v32 = vsub.f32 %v130_v29, %v135_v31 }
 0x20a   :  { %v137_v33 = vmul.f32 1.442695, %v136_v32 }
 0x20c   :  { %169 = vpow2.f32 %v137_v33 }
 0x212   :  { %v170_v34 = vpop.eup %169 }
 0x213   :  { %v139_v35 = vsel %vm132_vm3, %v170_v34, 0.0 }
 0x214   :  { %140 = vadd.xlane.f32.xlu0 %v139_v35 }
 0x287   :  { %v141_v36 = vpop.xlane.xlu0 %140 }
 0x288   :  { %171 = vlog2.f32 %v141_v36 }
 0x28e   :  { %v172_v37 = vpop.eup %171 }
 0x28f   :  { %v143_v38 = vmul.f32 0.6931472, %v172_v37 }
 0x291   :  { %v144_v39 = vsub.f32 %v136_v32, %v143_v38 }
 0x293   :  { %145 = vst.msk [vmem:[#allocation2] sm:$0xff] %vm132_vm3, %v144_v39 }
 0x294   :  { %156 = dma.vmem_to_hbm [thread:$0]  %s152_s5, 128, %s154_s19, [#allocation3]  }
 0x295   :  { %197 = dma.done.wait [#allocation3], 128  }
 0x296   :  { %198 = vsyncadd [#allocation3], 4294967168 }
 0x297   :  { %161 = vsyncpa [#allocation3], 1 }

</bundles_post_ra>
